<compile_context>
chip_gen: v7x
topology: tpu7x:2x2x1
jax: 0.10.0
libtpu: 0.0.40
codegen_flags: <defaults>
</compile_context>

<pallas_src>
import jax
import jax.numpy as jnp
from jax.experimental import pallas as pl
from jax.experimental.pallas import tpu as pltpu

INPUT_DIM = 4            # default of INNPhi
HIDDEN_DIM = 128         # default of AdditiveCouplingLayer
NUM_LAYERS = 4           # default of INNPhi
HALF_DIM = INPUT_DIM // 2
MAX_BATCH_TILE = 2048    # rows per grid step for large batches (multiple of 256)


def inn_phi_kernel(x_ref, w1_ref, b1_ref, w2_ref, b2_ref, w3_ref, b3_ref, y_ref):
    """All NUM_LAYERS additive coupling layers on one (tb, 4) batch tile.

    Layer i, even mask (i%2==0): masked cols (0,2) -> translation added to (1,3)
    Layer i, odd  mask (i%2==1): masked cols (1,3) -> translation added to (0,2)
    """
    x = x_ref[...]                 # (tb, 4) f32
    x0 = x[:, 0:1]
    x1 = x[:, 1:2]
    x2 = x[:, 2:3]
    x3 = x[:, 3:4]

    for i in range(NUM_LAYERS):
        if i % 2 == 0:
            s0, s1 = x0, x2        # even mask: read cols 0,2
        else:
            s0, s1 = x1, x3        # odd mask:  read cols 1,3

        # --- entry Linear (in=2, out=128): two VPU broadcast FMAs, no MXU pass.
        w1i = w1_ref[i]                                  # (2, 128) f32
        h = s0 * w1i[0:1, :] + s1 * w1i[1:2, :] + b1_ref[i]   # (tb, 128) f32
        h = jnp.maximum(h, 0.0)

        # --- hidden Linear (128 x 128): MXU, bf16 operands, f32 accumulate.
        h = jnp.dot(h.astype(jnp.bfloat16), w2_ref[i],
                    preferred_element_type=jnp.float32) + b2_ref[i]
        h = jnp.maximum(h, 0.0)

        # --- exit Linear (128 -> 2): MXU, bf16 operands, f32 accumulate.
        t = jnp.dot(h.astype(jnp.bfloat16), w3_ref[i],
                    preferred_element_type=jnp.float32) + b3_ref[i]   # (tb, 2)
        t0 = t[:, 0:1]
        t1 = t[:, 1:2]
        if i % 2 == 0:
            x1 = x1 + t0           # translation -> cols 1,3
            x3 = x3 + t1
        else:
            x0 = x0 + t0           # translation -> cols 0,2
            x2 = x2 + t1

    # Re-interleave back into (tb, 4) and write with one full-width store.
    y_ref[...] = jnp.concatenate([x0, x1, x2, x3], axis=1)


def make_params(key, num_layers=NUM_LAYERS, half_dim=HALF_DIM, hidden_dim=HIDDEN_DIM):
    """Deterministic synthetic parameters for the translation nets.

    Weights stored as (in_features, out_features) so the math is x @ W + b
    (equivalent to PyTorch's x @ W.T + b with W of shape (out, in)).
    Biases carry a leading length-1 axis so layer indexing yields (1, out).
    """
    ks = jax.random.split(key, num_layers * 6)
    k = iter(ks)

    def init(shape, fan_in):
        bound = 1.0 / jnp.sqrt(jnp.asarray(fan_in, jnp.float32))
        return jax.random.uniform(next(k), shape, jnp.float32, -bound, bound)

    w1 = jnp.stack([init((half_dim, hidden_dim), half_dim) for _ in range(num_layers)])
    b1 = jnp.stack([init((1, hidden_dim), half_dim) for _ in range(num_layers)])
    w2 = jnp.stack([init((hidden_dim, hidden_dim), hidden_dim) for _ in range(num_layers)])
    b2 = jnp.stack([init((1, hidden_dim), hidden_dim) for _ in range(num_layers)])
    w3 = jnp.stack([init((hidden_dim, half_dim), hidden_dim) for _ in range(num_layers)])
    b3 = jnp.stack([init((1, half_dim), hidden_dim) for _ in range(num_layers)])
    return w1, b1, w2, b2, w3, b3


@jax.jit
def inn_phi_forward(x, params):
    """Forward pass of INNPhi (reverse=False). x: (B, INPUT_DIM) float32."""
    w1, b1, w2, b2, w3, b3 = params
    B = x.shape[0]

    # Batch tile: full extent for small B (satisfies the full-dim exception to
    # the (8,128) rule), otherwise MAX_BATCH_TILE rows (multiple of 8).
    tb = B if B <= MAX_BATCH_TILE else MAX_BATCH_TILE
    grid = (pl.cdiv(B, tb),)

    # bf16 operands for the MXU matmuls (accumulation stays f32 in-kernel).
    w2_bf16 = w2.astype(jnp.bfloat16)
    w3_bf16 = w3.astype(jnp.bfloat16)

    L, HD, HID = NUM_LAYERS, HALF_DIM, HIDDEN_DIM
    const3 = lambda i: (0, 0, 0)   # weights/biases: VMEM-resident across the grid

    flops = 2 * B * L * (HD * HID + HID * HID + HID * HD)
    bytes_accessed = (2 * B * INPUT_DIM * 4
                      + L * (HD * HID * 4 + HID * 4 + HID * HID * 2 + HID * 4
                             + HID * HD * 2 + HD * 4))

    y = pl.pallas_call(
        inn_phi_kernel,
        out_shape=jax.ShapeDtypeStruct((B, INPUT_DIM), jnp.float32),
        grid_spec=pltpu.PrefetchScalarGridSpec(
            num_scalar_prefetch=0,
            grid=grid,
            in_specs=[
                pl.BlockSpec((tb, INPUT_DIM), lambda i: (i, 0)),   # x tile
                pl.BlockSpec((L, HD, HID), const3),                # w1 (f32, VPU path)
                pl.BlockSpec((L, 1, HID), const3),                 # b1
                pl.BlockSpec((L, HID, HID), const3),               # w2 (bf16)
                pl.BlockSpec((L, 1, HID), const3),                 # b2
                pl.BlockSpec((L, HID, HD), const3),                # w3 (bf16)
                pl.BlockSpec((L, 1, HD), const3),                  # b3
            ],
            out_specs=pl.BlockSpec((tb, INPUT_DIM), lambda i: (i, 0)),
        ),
        compiler_params=pltpu.CompilerParams(
            dimension_semantics=("parallel",),      # megacore batch sharding on v7x
            vmem_limit_bytes=32 << 20,
        ),
        cost_estimate=pl.CostEstimate(
            flops=flops, transcendentals=0, bytes_accessed=bytes_accessed),
    )(x, w1, b1, w2_bf16, b2, w3_bf16, b3)
    return y


def inn_phi_reference(x, params):
    """Pure-JAX f32 reference (mirrors the PyTorch forward exactly)."""
    w1, b1, w2, b2, w3, b3 = params
    for i in range(NUM_LAYERS):
        if i % 2 == 0:      # even mask: masked cols 0,2 ; translated cols 1,3
            masked = x[:, 0::2]
        else:               # odd mask:  masked cols 1,3 ; translated cols 0,2
            masked = x[:, 1::2]
        h = jnp.maximum(masked @ w1[i] + b1[i], 0.0)
        h = jnp.maximum(h @ w2[i] + b2[i], 0.0)
        t = h @ w3[i] + b3[i]
        if i % 2 == 0:
            x = x.at[:, 1::2].add(t)
        else:
            x = x.at[:, 0::2].add(t)
    return x


# TODO(synk): only the forward (reverse=False) path is implemented; the inverse
# (reverse=True) pass of the PyTorch module is not covered by this kernel.

if __name__ == "__main__":
    key = jax.random.PRNGKey(0)
    kx, kp = jax.random.split(key)

    B = 8
    x = jax.random.normal(kx, (B, INPUT_DIM), dtype=jnp.float32)
    params = make_params(kp)

    y = inn_phi_forward(x, params)
    y = jax.block_until_ready(y)

    y_ref = inn_phi_reference(x, params)
    assert y.shape == (B, INPUT_DIM)
    # Tolerance relaxed vs. the f32 reference because the MXU matmuls use bf16
    # operands (f32 accumulation); observed error is a few 1e-3 at most.
    assert jnp.allclose(y, y_ref, atol=2e-2, rtol=2e-2), "mismatch vs reference"

    print("KERNEL_OK")
</pallas_src>

<mosaic_0001>
module attributes {stable_mosaic.version = 11 : i64} {
  func.func @inn_phi_kernel(%arg0: i32, %arg1: memref<8x4xf32, #tpu.memory_space<vmem>>, %arg2: memref<4x2x128xf32, #tpu.memory_space<vmem>>, %arg3: memref<4x1x128xf32, #tpu.memory_space<vmem>>, %arg4: memref<4x128x128xbf16, #tpu.memory_space<vmem>>, %arg5: memref<4x1x128xf32, #tpu.memory_space<vmem>>, %arg6: memref<4x128x2xbf16, #tpu.memory_space<vmem>>, %arg7: memref<4x1x2xf32, #tpu.memory_space<vmem>>, %arg8: memref<8x4xf32, #tpu.memory_space<vmem>>) attributes {dimension_semantics = [#tpu.dimension_semantics<parallel>], iteration_bounds = array<i64: 1>, scalar_prefetch = 0 : i64, scratch_operands = 0 : i64, tpu.core_type = #tpu.core_type<tc>, window_params = [{transform_indices = @transform_0, window_bounds = array<i64: 8, 4>}, {pipeline_mode = #tpu.pipeline_mode<synchronous>, transform_indices = @transform_1, window_bounds = array<i64: 4, 2, 128>}, {pipeline_mode = #tpu.pipeline_mode<synchronous>, transform_indices = @transform_2, window_bounds = array<i64: 4, 1, 128>}, {pipeline_mode = #tpu.pipeline_mode<synchronous>, transform_indices = @transform_3, window_bounds = array<i64: 4, 128, 128>}, {pipeline_mode = #tpu.pipeline_mode<synchronous>, transform_indices = @transform_4, window_bounds = array<i64: 4, 1, 128>}, {pipeline_mode = #tpu.pipeline_mode<synchronous>, transform_indices = @transform_5, window_bounds = array<i64: 4, 128, 2>}, {pipeline_mode = #tpu.pipeline_mode<synchronous>, transform_indices = @transform_6, window_bounds = array<i64: 4, 1, 2>}, {transform_indices = @transform_7, window_bounds = array<i64: 8, 4>}]} {
    %c0 = arith.constant 0 : index
    %c0_0 = arith.constant 0 : index
    %0 = vector.load %arg1[%c0, %c0_0] : memref<8x4xf32, #tpu.memory_space<vmem>>, vector<8x4xf32>
    %1 = vector.extract_strided_slice %0 {offsets = [0, 0], sizes = [8, 1], strides = [1, 1]} : vector<8x4xf32> to vector<8x1xf32>
    %2 = vector.extract_strided_slice %0 {offsets = [0, 1], sizes = [8, 1], strides = [1, 1]} : vector<8x4xf32> to vector<8x1xf32>
    %3 = vector.extract_strided_slice %0 {offsets = [0, 2], sizes = [8, 1], strides = [1, 1]} : vector<8x4xf32> to vector<8x1xf32>
    %4 = vector.extract_strided_slice %0 {offsets = [0, 3], sizes = [8, 1], strides = [1, 1]} : vector<8x4xf32> to vector<8x1xf32>
    %c0_1 = arith.constant 0 : index
    %c0_2 = arith.constant 0 : index
    %c0_3 = arith.constant 0 : index
    %5 = vector.load %arg2[%c0_1, %c0_2, %c0_3] : memref<4x2x128xf32, #tpu.memory_space<vmem>>, vector<1x2x128xf32>
    %6 = vector.shape_cast %5 : vector<1x2x128xf32> to vector<2x128xf32>
    %7 = vector.extract_strided_slice %6 {offsets = [0, 0], sizes = [1, 128], strides = [1, 1]} : vector<2x128xf32> to vector<1x128xf32>
    %8 = vector.broadcast %1 : vector<8x1xf32> to vector<8x128xf32>
    %9 = vector.broadcast %7 : vector<1x128xf32> to vector<8x128xf32>
    %10 = arith.mulf %8, %9 : vector<8x128xf32>
    %11 = vector.extract_strided_slice %6 {offsets = [1, 0], sizes = [1, 128], strides = [1, 1]} : vector<2x128xf32> to vector<1x128xf32>
    %12 = vector.broadcast %3 : vector<8x1xf32> to vector<8x128xf32>
    %13 = vector.broadcast %11 : vector<1x128xf32> to vector<8x128xf32>
    %14 = arith.mulf %12, %13 : vector<8x128xf32>
    %15 = arith.addf %10, %14 : vector<8x128xf32>
    %c0_4 = arith.constant 0 : index
    %c0_5 = arith.constant 0 : index
    %c0_6 = arith.constant 0 : index
    %16 = vector.load %arg3[%c0_4, %c0_5, %c0_6] : memref<4x1x128xf32, #tpu.memory_space<vmem>>, vector<1x1x128xf32>
    %17 = vector.shape_cast %16 : vector<1x1x128xf32> to vector<1x128xf32>
    %18 = vector.broadcast %17 : vector<1x128xf32> to vector<8x128xf32>
    %19 = arith.addf %15, %18 : vector<8x128xf32>
    %cst = arith.constant 0.000000e+00 : f32
    %20 = vector.broadcast %cst : f32 to vector<8x128xf32>
    %21 = arith.maximumf %19, %20 : vector<8x128xf32>
    %22 = arith.truncf %21 : vector<8x128xf32> to vector<8x128xbf16>
    %c0_7 = arith.constant 0 : index
    %c0_8 = arith.constant 0 : index
    %c0_9 = arith.constant 0 : index
    %23 = vector.load %arg4[%c0_7, %c0_8, %c0_9] : memref<4x128x128xbf16, #tpu.memory_space<vmem>>, vector<1x128x128xbf16>
    %24 = vector.shape_cast %23 : vector<1x128x128xbf16> to vector<128x128xbf16>
    %cst_10 = arith.constant dense<0.000000e+00> : vector<8x128xf32>
    %25 = tpu.matmul %22, %24, %cst_10 {dimension_numbers = #tpu.dot_dimension_numbers<[1], [0], [0], [1], [0, 0, 1, 1], [], []>} : vector<8x128xbf16>, vector<128x128xbf16>, vector<8x128xf32> -> vector<8x128xf32>
    %c0_11 = arith.constant 0 : index
    %c0_12 = arith.constant 0 : index
    %c0_13 = arith.constant 0 : index
    %26 = vector.load %arg5[%c0_11, %c0_12, %c0_13] : memref<4x1x128xf32, #tpu.memory_space<vmem>>, vector<1x1x128xf32>
    %27 = vector.shape_cast %26 : vector<1x1x128xf32> to vector<1x128xf32>
    %28 = vector.broadcast %27 : vector<1x128xf32> to vector<8x128xf32>
    %29 = arith.addf %25, %28 : vector<8x128xf32>
    %cst_14 = arith.constant 0.000000e+00 : f32
    %30 = vector.broadcast %cst_14 : f32 to vector<8x128xf32>
    %31 = arith.maximumf %29, %30 : vector<8x128xf32>
    %32 = arith.truncf %31 : vector<8x128xf32> to vector<8x128xbf16>
    %c0_15 = arith.constant 0 : index
    %c0_16 = arith.constant 0 : index
    %c0_17 = arith.constant 0 : index
    %33 = vector.load %arg6[%c0_15, %c0_16, %c0_17] : memref<4x128x2xbf16, #tpu.memory_space<vmem>>, vector<1x128x2xbf16>
    %34 = vector.shape_cast %33 : vector<1x128x2xbf16> to vector<128x2xbf16>
    %cst_18 = arith.constant dense<0.000000e+00> : vector<8x2xf32>
    %35 = tpu.matmul %32, %34, %cst_18 {dimension_numbers = #tpu.dot_dimension_numbers<[1], [0], [0], [1], [0, 0, 1, 1], [], []>} : vector<8x128xbf16>, vector<128x2xbf16>, vector<8x2xf32> -> vector<8x2xf32>
    %c0_19 = arith.constant 0 : index
    %c0_20 = arith.constant 0 : index
    %c0_21 = arith.constant 0 : index
    %36 = vector.load %arg7[%c0_19, %c0_20, %c0_21] : memref<4x1x2xf32, #tpu.memory_space<vmem>>, vector<1x1x2xf32>
    %37 = vector.shape_cast %36 : vector<1x1x2xf32> to vector<1x2xf32>
    %38 = vector.broadcast %37 : vector<1x2xf32> to vector<8x2xf32>
    %39 = arith.addf %35, %38 : vector<8x2xf32>
    %40 = vector.extract_strided_slice %39 {offsets = [0, 0], sizes = [8, 1], strides = [1, 1]} : vector<8x2xf32> to vector<8x1xf32>
    %41 = vector.extract_strided_slice %39 {offsets = [0, 1], sizes = [8, 1], strides = [1, 1]} : vector<8x2xf32> to vector<8x1xf32>
    %42 = arith.addf %2, %40 : vector<8x1xf32>
    %43 = arith.addf %4, %41 : vector<8x1xf32>
    %c1 = arith.constant 1 : index
    %c0_22 = arith.constant 0 : index
    %c0_23 = arith.constant 0 : index
    %44 = vector.load %arg2[%c1, %c0_22, %c0_23] : memref<4x2x128xf32, #tpu.memory_space<vmem>>, vector<1x2x128xf32>
    %45 = vector.shape_cast %44 : vector<1x2x128xf32> to vector<2x128xf32>
    %46 = vector.extract_strided_slice %45 {offsets = [0, 0], sizes = [1, 128], strides = [1, 1]} : vector<2x128xf32> to vector<1x128xf32>
    %47 = vector.broadcast %42 : vector<8x1xf32> to vector<8x128xf32>
    %48 = vector.broadcast %46 : vector<1x128xf32> to vector<8x128xf32>
    %49 = arith.mulf %47, %48 : vector<8x128xf32>
    %50 = vector.extract_strided_slice %45 {offsets = [1, 0], sizes = [1, 128], strides = [1, 1]} : vector<2x128xf32> to vector<1x128xf32>
    %51 = vector.broadcast %43 : vector<8x1xf32> to vector<8x128xf32>
    %52 = vector.broadcast %50 : vector<1x128xf32> to vector<8x128xf32>
    %53 = arith.mulf %51, %52 : vector<8x128xf32>
    %54 = arith.addf %49, %53 : vector<8x128xf32>
    %c1_24 = arith.constant 1 : index
    %c0_25 = arith.constant 0 : index
    %c0_26 = arith.constant 0 : index
    %55 = vector.load %arg3[%c1_24, %c0_25, %c0_26] : memref<4x1x128xf32, #tpu.memory_space<vmem>>, vector<1x1x128xf32>
    %56 = vector.shape_cast %55 : vector<1x1x128xf32> to vector<1x128xf32>
    %57 = vector.broadcast %56 : vector<1x128xf32> to vector<8x128xf32>
    %58 = arith.addf %54, %57 : vector<8x128xf32>
    %cst_27 = arith.constant 0.000000e+00 : f32
    %59 = vector.broadcast %cst_27 : f32 to vector<8x128xf32>
    %60 = arith.maximumf %58, %59 : vector<8x128xf32>
    %61 = arith.truncf %60 : vector<8x128xf32> to vector<8x128xbf16>
    %c1_28 = arith.constant 1 : index
    %c0_29 = arith.constant 0 : index
    %c0_30 = arith.constant 0 : index
    %62 = vector.load %arg4[%c1_28, %c0_29, %c0_30] : memref<4x128x128xbf16, #tpu.memory_space<vmem>>, vector<1x128x128xbf16>
    %63 = vector.shape_cast %62 : vector<1x128x128xbf16> to vector<128x128xbf16>
    %cst_31 = arith.constant dense<0.000000e+00> : vector<8x128xf32>
    %64 = tpu.matmul %61, %63, %cst_31 {dimension_numbers = #tpu.dot_dimension_numbers<[1], [0], [0], [1], [0, 0, 1, 1], [], []>} : vector<8x128xbf16>, vector<128x128xbf16>, vector<8x128xf32> -> vector<8x128xf32>
    %c1_32 = arith.constant 1 : index
    %c0_33 = arith.constant 0 : index
    %c0_34 = arith.constant 0 : index
    %65 = vector.load %arg5[%c1_32, %c0_33, %c0_34] : memref<4x1x128xf32, #tpu.memory_space<vmem>>, vector<1x1x128xf32>
    %66 = vector.shape_cast %65 : vector<1x1x128xf32> to vector<1x128xf32>
    %67 = vector.broadcast %66 : vector<1x128xf32> to vector<8x128xf32>
    %68 = arith.addf %64, %67 : vector<8x128xf32>
    %cst_35 = arith.constant 0.000000e+00 : f32
    %69 = vector.broadcast %cst_35 : f32 to vector<8x128xf32>
    %70 = arith.maximumf %68, %69 : vector<8x128xf32>
    %71 = arith.truncf %70 : vector<8x128xf32> to vector<8x128xbf16>
    %c1_36 = arith.constant 1 : index
    %c0_37 = arith.constant 0 : index
    %c0_38 = arith.constant 0 : index
    %72 = vector.load %arg6[%c1_36, %c0_37, %c0_38] : memref<4x128x2xbf16, #tpu.memory_space<vmem>>, vector<1x128x2xbf16>
    %73 = vector.shape_cast %72 : vector<1x128x2xbf16> to vector<128x2xbf16>
    %cst_39 = arith.constant dense<0.000000e+00> : vector<8x2xf32>
    %74 = tpu.matmul %71, %73, %cst_39 {dimension_numbers = #tpu.dot_dimension_numbers<[1], [0], [0], [1], [0, 0, 1, 1], [], []>} : vector<8x128xbf16>, vector<128x2xbf16>, vector<8x2xf32> -> vector<8x2xf32>
    %c1_40 = arith.constant 1 : index
    %c0_41 = arith.constant 0 : index
    %c0_42 = arith.constant 0 : index
    %75 = vector.load %arg7[%c1_40, %c0_41, %c0_42] : memref<4x1x2xf32, #tpu.memory_space<vmem>>, vector<1x1x2xf32>
    %76 = vector.shape_cast %75 : vector<1x1x2xf32> to vector<1x2xf32>
    %77 = vector.broadcast %76 : vector<1x2xf32> to vector<8x2xf32>
    %78 = arith.addf %74, %77 : vector<8x2xf32>
    %79 = vector.extract_strided_slice %78 {offsets = [0, 0], sizes = [8, 1], strides = [1, 1]} : vector<8x2xf32> to vector<8x1xf32>
    %80 = vector.extract_strided_slice %78 {offsets = [0, 1], sizes = [8, 1], strides = [1, 1]} : vector<8x2xf32> to vector<8x1xf32>
    %81 = arith.addf %1, %79 : vector<8x1xf32>
    %82 = arith.addf %3, %80 : vector<8x1xf32>
    %c2 = arith.constant 2 : index
    %c0_43 = arith.constant 0 : index
    %c0_44 = arith.constant 0 : index
    %83 = vector.load %arg2[%c2, %c0_43, %c0_44] : memref<4x2x128xf32, #tpu.memory_space<vmem>>, vector<1x2x128xf32>
    %84 = vector.shape_cast %83 : vector<1x2x128xf32> to vector<2x128xf32>
    %85 = vector.extract_strided_slice %84 {offsets = [0, 0], sizes = [1, 128], strides = [1, 1]} : vector<2x128xf32> to vector<1x128xf32>
    %86 = vector.broadcast %81 : vector<8x1xf32> to vector<8x128xf32>
    %87 = vector.broadcast %85 : vector<1x128xf32> to vector<8x128xf32>
    %88 = arith.mulf %86, %87 : vector<8x128xf32>
    %89 = vector.extract_strided_slice %84 {offsets = [1, 0], sizes = [1, 128], strides = [1, 1]} : vector<2x128xf32> to vector<1x128xf32>
    %90 = vector.broadcast %82 : vector<8x1xf32> to vector<8x128xf32>
    %91 = vector.broadcast %89 : vector<1x128xf32> to vector<8x128xf32>
    %92 = arith.mulf %90, %91 : vector<8x128xf32>
    %93 = arith.addf %88, %92 : vector<8x128xf32>
    %c2_45 = arith.constant 2 : index
    %c0_46 = arith.constant 0 : index
    %c0_47 = arith.constant 0 : index
    %94 = vector.load %arg3[%c2_45, %c0_46, %c0_47] : memref<4x1x128xf32, #tpu.memory_space<vmem>>, vector<1x1x128xf32>
    %95 = vector.shape_cast %94 : vector<1x1x128xf32> to vector<1x128xf32>
    %96 = vector.broadcast %95 : vector<1x128xf32> to vector<8x128xf32>
    %97 = arith.addf %93, %96 : vector<8x128xf32>
    %cst_48 = arith.constant 0.000000e+00 : f32
    %98 = vector.broadcast %cst_48 : f32 to vector<8x128xf32>
    %99 = arith.maximumf %97, %98 : vector<8x128xf32>
    %100 = arith.truncf %99 : vector<8x128xf32> to vector<8x128xbf16>
    %c2_49 = arith.constant 2 : index
    %c0_50 = arith.constant 0 : index
    %c0_51 = arith.constant 0 : index
    %101 = vector.load %arg4[%c2_49, %c0_50, %c0_51] : memref<4x128x128xbf16, #tpu.memory_space<vmem>>, vector<1x128x128xbf16>
    %102 = vector.shape_cast %101 : vector<1x128x128xbf16> to vector<128x128xbf16>
    %cst_52 = arith.constant dense<0.000000e+00> : vector<8x128xf32>
    %103 = tpu.matmul %100, %102, %cst_52 {dimension_numbers = #tpu.dot_dimension_numbers<[1], [0], [0], [1], [0, 0, 1, 1], [], []>} : vector<8x128xbf16>, vector<128x128xbf16>, vector<8x128xf32> -> vector<8x128xf32>
    %c2_53 = arith.constant 2 : index
    %c0_54 = arith.constant 0 : index
    %c0_55 = arith.constant 0 : index
    %104 = vector.load %arg5[%c2_53, %c0_54, %c0_55] : memref<4x1x128xf32, #tpu.memory_space<vmem>>, vector<1x1x128xf32>
    %105 = vector.shape_cast %104 : vector<1x1x128xf32> to vector<1x128xf32>
    %106 = vector.broadcast %105 : vector<1x128xf32> to vector<8x128xf32>
    %107 = arith.addf %103, %106 : vector<8x128xf32>
    %cst_56 = arith.constant 0.000000e+00 : f32
    %108 = vector.broadcast %cst_56 : f32 to vector<8x128xf32>
    %109 = arith.maximumf %107, %108 : vector<8x128xf32>
    %110 = arith.truncf %109 : vector<8x128xf32> to vector<8x128xbf16>
    %c2_57 = arith.constant 2 : index
    %c0_58 = arith.constant 0 : index
    %c0_59 = arith.constant 0 : index
    %111 = vector.load %arg6[%c2_57, %c0_58, %c0_59] : memref<4x128x2xbf16, #tpu.memory_space<vmem>>, vector<1x128x2xbf16>
    %112 = vector.shape_cast %111 : vector<1x128x2xbf16> to vector<128x2xbf16>
    %cst_60 = arith.constant dense<0.000000e+00> : vector<8x2xf32>
    %113 = tpu.matmul %110, %112, %cst_60 {dimension_numbers = #tpu.dot_dimension_numbers<[1], [0], [0], [1], [0, 0, 1, 1], [], []>} : vector<8x128xbf16>, vector<128x2xbf16>, vector<8x2xf32> -> vector<8x2xf32>
    %c2_61 = arith.constant 2 : index
    %c0_62 = arith.constant 0 : index
    %c0_63 = arith.constant 0 : index
    %114 = vector.load %arg7[%c2_61, %c0_62, %c0_63] : memref<4x1x2xf32, #tpu.memory_space<vmem>>, vector<1x1x2xf32>
    %115 = vector.shape_cast %114 : vector<1x1x2xf32> to vector<1x2xf32>
    %116 = vector.broadcast %115 : vector<1x2xf32> to vector<8x2xf32>
    %117 = arith.addf %113, %116 : vector<8x2xf32>
    %118 = vector.extract_strided_slice %117 {offsets = [0, 0], sizes = [8, 1], strides = [1, 1]} : vector<8x2xf32> to vector<8x1xf32>
    %119 = vector.extract_strided_slice %117 {offsets = [0, 1], sizes = [8, 1], strides = [1, 1]} : vector<8x2xf32> to vector<8x1xf32>
    %120 = arith.addf %42, %118 : vector<8x1xf32>
    %121 = arith.addf %43, %119 : vector<8x1xf32>
    %c3 = arith.constant 3 : index
    %c0_64 = arith.constant 0 : index
    %c0_65 = arith.constant 0 : index
    %122 = vector.load %arg2[%c3, %c0_64, %c0_65] : memref<4x2x128xf32, #tpu.memory_space<vmem>>, vector<1x2x128xf32>
    %123 = vector.shape_cast %122 : vector<1x2x128xf32> to vector<2x128xf32>
    %124 = vector.extract_strided_slice %123 {offsets = [0, 0], sizes = [1, 128], strides = [1, 1]} : vector<2x128xf32> to vector<1x128xf32>
    %125 = vector.broadcast %120 : vector<8x1xf32> to vector<8x128xf32>
    %126 = vector.broadcast %124 : vector<1x128xf32> to vector<8x128xf32>
    %127 = arith.mulf %125, %126 : vector<8x128xf32>
    %128 = vector.extract_strided_slice %123 {offsets = [1, 0], sizes = [1, 128], strides = [1, 1]} : vector<2x128xf32> to vector<1x128xf32>
    %129 = vector.broadcast %121 : vector<8x1xf32> to vector<8x128xf32>
    %130 = vector.broadcast %128 : vector<1x128xf32> to vector<8x128xf32>
    %131 = arith.mulf %129, %130 : vector<8x128xf32>
    %132 = arith.addf %127, %131 : vector<8x128xf32>
    %c3_66 = arith.constant 3 : index
    %c0_67 = arith.constant 0 : index
    %c0_68 = arith.constant 0 : index
    %133 = vector.load %arg3[%c3_66, %c0_67, %c0_68] : memref<4x1x128xf32, #tpu.memory_space<vmem>>, vector<1x1x128xf32>
    %134 = vector.shape_cast %133 : vector<1x1x128xf32> to vector<1x128xf32>
    %135 = vector.broadcast %134 : vector<1x128xf32> to vector<8x128xf32>
    %136 = arith.addf %132, %135 : vector<8x128xf32>
    %cst_69 = arith.constant 0.000000e+00 : f32
    %137 = vector.broadcast %cst_69 : f32 to vector<8x128xf32>
    %138 = arith.maximumf %136, %137 : vector<8x128xf32>
    %139 = arith.truncf %138 : vector<8x128xf32> to vector<8x128xbf16>
    %c3_70 = arith.constant 3 : index
    %c0_71 = arith.constant 0 : index
    %c0_72 = arith.constant 0 : index
    %140 = vector.load %arg4[%c3_70, %c0_71, %c0_72] : memref<4x128x128xbf16, #tpu.memory_space<vmem>>, vector<1x128x128xbf16>
    %141 = vector.shape_cast %140 : vector<1x128x128xbf16> to vector<128x128xbf16>
    %cst_73 = arith.constant dense<0.000000e+00> : vector<8x128xf32>
    %142 = tpu.matmul %139, %141, %cst_73 {dimension_numbers = #tpu.dot_dimension_numbers<[1], [0], [0], [1], [0, 0, 1, 1], [], []>} : vector<8x128xbf16>, vector<128x128xbf16>, vector<8x128xf32> -> vector<8x128xf32>
    %c3_74 = arith.constant 3 : index
    %c0_75 = arith.constant 0 : index
    %c0_76 = arith.constant 0 : index
    %143 = vector.load %arg5[%c3_74, %c0_75, %c0_76] : memref<4x1x128xf32, #tpu.memory_space<vmem>>, vector<1x1x128xf32>
    %144 = vector.shape_cast %143 : vector<1x1x128xf32> to vector<1x128xf32>
    %145 = vector.broadcast %144 : vector<1x128xf32> to vector<8x128xf32>
    %146 = arith.addf %142, %145 : vector<8x128xf32>
    %cst_77 = arith.constant 0.000000e+00 : f32
    %147 = vector.broadcast %cst_77 : f32 to vector<8x128xf32>
    %148 = arith.maximumf %146, %147 : vector<8x128xf32>
    %149 = arith.truncf %148 : vector<8x128xf32> to vector<8x128xbf16>
    %c3_78 = arith.constant 3 : index
    %c0_79 = arith.constant 0 : index
    %c0_80 = arith.constant 0 : index
    %150 = vector.load %arg6[%c3_78, %c0_79, %c0_80] : memref<4x128x2xbf16, #tpu.memory_space<vmem>>, vector<1x128x2xbf16>
    %151 = vector.shape_cast %150 : vector<1x128x2xbf16> to vector<128x2xbf16>
    %cst_81 = arith.constant dense<0.000000e+00> : vector<8x2xf32>
    %152 = tpu.matmul %149, %151, %cst_81 {dimension_numbers = #tpu.dot_dimension_numbers<[1], [0], [0], [1], [0, 0, 1, 1], [], []>} : vector<8x128xbf16>, vector<128x2xbf16>, vector<8x2xf32> -> vector<8x2xf32>
    %c3_82 = arith.constant 3 : index
    %c0_83 = arith.constant 0 : index
    %c0_84 = arith.constant 0 : index
    %153 = vector.load %arg7[%c3_82, %c0_83, %c0_84] : memref<4x1x2xf32, #tpu.memory_space<vmem>>, vector<1x1x2xf32>
    %154 = vector.shape_cast %153 : vector<1x1x2xf32> to vector<1x2xf32>
    %155 = vector.broadcast %154 : vector<1x2xf32> to vector<8x2xf32>
    %156 = arith.addf %152, %155 : vector<8x2xf32>
    %157 = vector.extract_strided_slice %156 {offsets = [0, 0], sizes = [8, 1], strides = [1, 1]} : vector<8x2xf32> to vector<8x1xf32>
    %158 = vector.extract_strided_slice %156 {offsets = [0, 1], sizes = [8, 1], strides = [1, 1]} : vector<8x2xf32> to vector<8x1xf32>
    %159 = arith.addf %81, %157 : vector<8x1xf32>
    %160 = arith.addf %82, %158 : vector<8x1xf32>
    %161 = tpu.concatenate %159, %120, %160, %121 in 1 : vector<8x1xf32>, vector<8x1xf32>, vector<8x1xf32>, vector<8x1xf32> -> vector<8x4xf32>
    %c0_85 = arith.constant 0 : index
    %c0_86 = arith.constant 0 : index
    %162 = vector.load %arg8[%c0_85, %c0_86] : memref<8x4xf32, #tpu.memory_space<vmem>>, vector<8x4xf32>
    tpu.vector_store %arg8[%c0_85, %c0_86], %161 {strides = array<i32>} : memref<8x4xf32, #tpu.memory_space<vmem>>, vector<8x4xf32>,
    return
  }
  func.func @transform_0(%arg0: i32) -> (i32, i32) {
    %c0_i32 = arith.constant 0 : i32
    %c0_i32_0 = arith.constant 0 : i32
    return %arg0, %c0_i32 : i32, i32
  }
  func.func @transform_1(%arg0: i32) -> (i32, i32, i32) {
    %c0_i32 = arith.constant 0 : i32
    %c0_i32_0 = arith.constant 0 : i32
    %c0_i32_1 = arith.constant 0 : i32
    %c0_i32_2 = arith.constant 0 : i32
    return %c0_i32, %c0_i32_0, %c0_i32_1 : i32, i32, i32
  }
  func.func @transform_2(%arg0: i32) -> (i32, i32, i32) {
    %c0_i32 = arith.constant 0 : i32
    %c0_i32_0 = arith.constant 0 : i32
    %c0_i32_1 = arith.constant 0 : i32
    %c0_i32_2 = arith.constant 0 : i32
    return %c0_i32, %c0_i32_0, %c0_i32_1 : i32, i32, i32
  }
  func.func @transform_3(%arg0: i32) -> (i32, i32, i32) {
    %c0_i32 = arith.constant 0 : i32
    %c0_i32_0 = arith.constant 0 : i32
    %c0_i32_1 = arith.constant 0 : i32
    %c0_i32_2 = arith.constant 0 : i32
    return %c0_i32, %c0_i32_0, %c0_i32_1 : i32, i32, i32
  }
  func.func @transform_4(%arg0: i32) -> (i32, i32, i32) {
    %c0_i32 = arith.constant 0 : i32
    %c0_i32_0 = arith.constant 0 : i32
    %c0_i32_1 = arith.constant 0 : i32
    %c0_i32_2 = arith.constant 0 : i32
    return %c0_i32, %c0_i32_0, %c0_i32_1 : i32, i32, i32
  }
  func.func @transform_5(%arg0: i32) -> (i32, i32, i32) {
    %c0_i32 = arith.constant 0 : i32
    %c0_i32_0 = arith.constant 0 : i32
    %c0_i32_1 = arith.constant 0 : i32
    %c0_i32_2 = arith.constant 0 : i32
    return %c0_i32, %c0_i32_0, %c0_i32_1 : i32, i32, i32
  }
  func.func @transform_6(%arg0: i32) -> (i32, i32, i32) {
    %c0_i32 = arith.constant 0 : i32
    %c0_i32_0 = arith.constant 0 : i32
    %c0_i32_1 = arith.constant 0 : i32
    %c0_i32_2 = arith.constant 0 : i32
    return %c0_i32, %c0_i32_0, %c0_i32_1 : i32, i32, i32
  }
  func.func @transform_7(%arg0: i32) -> (i32, i32) {
    %c0_i32 = arith.constant 0 : i32
    %c0_i32_0 = arith.constant 0 : i32
    return %arg0, %c0_i32 : i32, i32
  }
}

</mosaic_0001>

<bundles_post_ra>
// kernel: inn_phi_forward.1
= control target key start
LH: loop header
LB: loop body
LE: loop exit
PB: predicated region body
PF: predicated region fallthrough
CT: control target
= control target key end

     0   :  { %v1608_v0 = vmov 0   ;;  %v1609_v2 = vmov 0.0   ;;  %v1610_v5 = vmov 2   ;;  %vm1611_vm0 = vmmov 0   ;;  %s1614_s24 = smov 1   ;;  %s1615_s27 = smov 2   ;;  %s2041_s0 = inlined_call_operand.vmem [shape: f32[8,4], index: 0, kind: input, shape index: {}]   ;;  %s2042_s3 = inlined_call_operand.vmem [shape: bf16[4,128,128], index: 3, kind: input, shape index: {}]   ;;  %s2043_s5 = inlined_call_operand.vmem [shape: bf16[4,128,2], index: 5, kind: input, shape index: {}]   ;;  %s2044_s1 = inlined_call_operand.vmem [shape: f32[4,2,128], index: 1, kind: input, shape index: {}]   ;;  %s2045_s2 = inlined_call_operand.vmem [shape: f32[4,1,128], index: 2, kind: input, shape index: {}]   ;;  %s2046_s4 = inlined_call_operand.vmem [shape: f32[4,1,128], index: 4, kind: input, shape index: {}]   ;;  %s2047_s6 = inlined_call_operand.vmem [shape: f32[4,1,2], index: 6, kind: input, shape index: {}]   ;;  %s2048_s7 = inlined_call_operand.vmem [shape: f32[8,4], index: 7, kind: output, shape index: {}]  }
   0x1   :  { %1535 = vset.pattern.permute.xlu0 %v1608_v0  ;;  %v1660_v1 = vld [vmem:[%s2041_s0] sm:$0xff]  ;;  %1367 = vmatprep.subr.bf16.mxu0 %v1609_v2  ;;  %v1545_v4 = vld [vmem:[%s2042_s3 + $0x8] sm:$0xff]   ;;  %v1546_v6 = vld [vmem:[%s2042_s3 + $0x10] sm:$0xff]   ;;  %v34_v18 = vlaneseq  ;;  %v1612_v44 = vmov 1   ;;  %v1613_v45 = vmov 3   ;;  %vm1099_vm1 = vcmask 7168  }
   0x2   :  { %31 = vperm.xlu0 %1535, %v1660_v1   ;;  %v1544_v3 = vld [vmem:[%s2042_s3] sm:$0xff]   ;;  %1387 = vmatprep.subr.bf16.mxu1 %v1609_v2  ;;  %v1547_v7 = vld [vmem:[%s2042_s3 + $0x18] sm:$0xff]   ;;  %v1549_v10 = vld [vmem:[%s2042_s3 + $0x28] sm:$0xff]   ;;  %vm1101_vm2 = vcmask 15360   ;;  %vm1103_vm3 = vcmask 23552   ;;  %vm1105_vm4 = vcmask 31744  }
   0x3   :  { %1368 = vmatpush3.bf16.msra.mxu0 %v1544_v3  ;;  %1383 = vmatprep.mubr.msk.bf16.mxu0 %vm1611_vm0, %v1609_v2  ;;  %v1548_v8 = vld [vmem:[%s2042_s3 + $0x20] sm:$0xff]   ;;  %v1553_v11 = vld [vmem:[%s2043_s5 + $0x8] sm:$0xff]   ;;  %v1550_v12 = vld [vmem:[%s2042_s3 + $0x30] sm:$0xff]   ;;  %v35_v19 = vshrl.u32 %v34_v18, 7 }
   0x4   :  { %1369 = vmatprep.subr.bf16.mxu0 %v1609_v2  ;;  %1403 = vmatprep.mubr.msk.bf16.mxu1 %vm1611_vm0, %v1609_v2  ;;  %v1552_v9 = vld [vmem:[%s2043_s5] sm:$0xff]   ;;  %v1554_v13 = vld [vmem:[%s2043_s5 + $0x10] sm:$0xff]   ;;  %v1551_v14 = vld [vmem:[%s2042_s3 + $0x38] sm:$0xff]  }
   0x5   :  { %1388 = vmatpush3.bf16.msra.mxu1 %v1552_v9  ;;  %v1555_v15 = vld [vmem:[%s2043_s5 + $0x18] sm:$0xff]   ;;  %v1556_v16 = vld [vmem:[%s2043_s5 + $0x20] sm:$0xff]   ;;  %v1557_v17 = vld [vmem:[%s2043_s5 + $0x28] sm:$0xff]   ;;  %v1727_v20 = vsub.s32 0, %v35_v19  ;;  %v1729_v21 = vsub.s32 1, %v35_v19  ;;  %1537 = vset.pattern.permute.xlu1 %v1612_v44 }
   0x6   :  { %1536 = vset.pattern.permute.xlu0 %v1610_v5  ;;  %1389 = vmatprep.subr.bf16.mxu1 %v1609_v2  ;;  %v28_v22 = vld [vmem:[%s2044_s1] sm:$0x3]  ;;  %v1558_v34 = vld [vmem:[%s2043_s5 + $0x30] sm:$0xff]   ;;  %v1559_v35 = vld [vmem:[%s2043_s5 + $0x38] sm:$0xff]  }
   0x7   :  { %40 = vperm.xlu0 %1536, %v1660_v1   ;;  %1370 = vmatpush3.bf16.msra.mxu0 %v1545_v4  ;;  %v37_v24 = vrot.slane %v28_v22, %v1727_v20  ;;  %v46_v25 = vrot.slane %v28_v22, %v1729_v21  ;;  %v1111_v29 = vld [vmem:[%s2045_s2] ss:$0 sm:$0xff]  ;;  %v1561_v48 = vld [vmem:[%s2042_s3 + $0x48] sm:$0xff]   ;;  %v1562_v53 = vld [vmem:[%s2042_s3 + $0x50] sm:$0xff]  }
   0x8   :  { %1371 = vmatprep.subr.bf16.mxu0 %v1609_v2  ;;  %v1112_v36 = vld [vmem:[%s2046_s4] ss:$0 sm:$0xff]  ;;  %v1563_v55 = vld [vmem:[%s2042_s3 + $0x58] sm:$0xff]   ;;  %v1565_v59 = vld [vmem:[%s2042_s3 + $0x68] sm:$0xff]  }
   0x9   :  { %1390 = vmatpush3.bf16.msra.mxu1 %v1553_v11  ;;  %v1560_v46 = vld [vmem:[%s2042_s3 + $0x40] sm:$0xff]   ;;  %v1566_v62 = vld [vmem:[%s2042_s3 + $0x70] sm:$0xff]   ;;  %v1567_v63 = vld [vmem:[%s2042_s3 + $0x78] sm:$0xff]  }
   0xa   :  { %1391 = vmatprep.subr.bf16.mxu1 %v1609_v2  ;;  %v1121_v47 = vld [vmem:[%s2047_s6] ss:$0 sm:$0xff]  ;;  %v1569_v3 = vld [vmem:[%s2043_s5 + $0x48] sm:$0xff]   ;;  %v1570_v4 = vld [vmem:[%s2043_s5 + $0x50] sm:$0xff]  }
   0xb   :  { %1372 = vmatpush3.bf16.msra.mxu0 %v1546_v6  ;;  %1538 = vset.pattern.permute.xlu0 %v1613_v45  ;;  %v1564_v56 = vld [vmem:[%s2042_s3 + $0x60] sm:$0xff]   ;;  %v1574_v22 = vld [vmem:[%s2043_s5 + $0x70] sm:$0xff]  }
   0xc   :  { %1373 = vmatprep.subr.bf16.mxu0 %v1609_v2  ;;  %v1572_v6 = vld [vmem:[%s2043_s5 + $0x60] sm:$0xff]  }
   0xd   :  { %1392 = vmatpush3.bf16.msra.mxu1 %v1554_v13 }
   0xe   :  { %1393 = vmatprep.subr.bf16.mxu1 %v1609_v2 }
   0xf   :  { %1374 = vmatpush3.bf16.msra.mxu0 %v1547_v7  ;;  %v1573_v7 = vld [vmem:[%s2043_s5 + $0x68] sm:$0xff]  }
  0x10   :  { %1375 = vmatprep.subr.bf16.mxu0 %v1609_v2 }
  0x11   :  { %1394 = vmatpush3.bf16.msra.mxu1 %v1555_v15  ;;  %v1132_v15 = vld [vmem:[%s2045_s2 + $0x1] ss:$0 sm:$0xff] }
  0x12   :  { %1395 = vmatprep.subr.bf16.mxu1 %v1609_v2 }
  0x13   :  { %1376 = vmatpush3.bf16.msra.mxu0 %v1548_v8  ;;  %v1130_v8 = vld [vmem:[%s2044_s1 + $0x2] sm:$0x3] }
  0x14   :  { %1377 = vmatprep.subr.bf16.mxu0 %v1609_v2  ;;  %v302_v9 = vrot.slane %v1130_v8, %v1727_v20 }
  0x15   :  { %1396 = vmatpush3.bf16.msra.mxu1 %v1556_v16 }
  0x16   :  { %1397 = vmatprep.subr.bf16.mxu1 %v1609_v2 }
  0x17   :  { %1378 = vmatpush3.bf16.msra.mxu0 %v1549_v10  ;;  %v312_v10 = vrot.slane %v1130_v8, %v1729_v21  ;;  %v1591_v8 = vld [vmem:[%s2043_s5 + $0xb8] sm:$0xff]  }
  0x18   :  { %1379 = vmatprep.subr.bf16.mxu0 %v1609_v2 }
  0x19   :  { %1398 = vmatpush3.bf16.msra.mxu1 %v1557_v17 }
  0x1a   :  { %1399 = vmatprep.subr.bf16.mxu1 %v1609_v2 }
  0x1b   :  { %1380 = vmatpush3.bf16.msra.mxu0 %v1550_v12 }
  0x1c   :  { %1381 = vmatprep.subr.bf16.mxu0 %v1609_v2 }
  0x1d   :  { %1400 = vmatpush3.bf16.msra.mxu1 %v1558_v34 }
  0x1e   :  { %1401 = vmatprep.subr.bf16.mxu1 %v1609_v2 }
  0x1f   :  { %1382 = vmatpush3.bf16.msra.mxu0 %v1551_v14 }
  0x20   :  { %1407 = vmatprep.subr.bf16.mxu0 %v1609_v2 }
  0x21   :  { %1402 = vmatpush3.bf16.msra.mxu1 %v1559_v35 }
  0x22   :  { %1427 = vmatprep.subr.bf16.mxu1 %v1609_v2 }
  0x81   :  { %v32_v23 = vpop.permute.xlu0 %31 }
  0x82   :  { %v38_v27 = vmul.f32 %v37_v24, %v32_v23  ;;  %v1575_v23 = vld [vmem:[%s2043_s5 + $0x78] sm:$0xff]   ;;  %v1150_v24 = vld [vmem:[%s2046_s4 + $0x1] ss:$0 sm:$0xff] }
  0x86   :  { %v41_v26 = vpop.permute.xlu0 %40 }
  0x87   :  { %v47_v28 = vmul.f32 %v46_v25, %v41_v26 }
  0x89   :  { %v48_v30 = vadd.f32 %v47_v28, %v38_v27 }
  0x8b   :  { %v56_v31 = vadd.f32 %v1111_v29, %v48_v30 }
  0x8d   :  { %v57_v32 = vmax.f32 %v56_v31, 0.0 }
  0x8f   :  { %v58_v33 = vpack.c.bf16 %v57_v32, %v57_v32  ;;  %v1176_v32 = vld [vmem:[%s2047_s6 + $0x1] ss:$0 sm:$0xff] }
  0x91   :  { %1384 = vmatmul.mubr.bf16.vlgmr.msra.gmra.mrb[0].mxu0 %v58_v33 }
  0x92   :  { %1423 = vmatprep.mubr.msk.bf16.mxu0 %vm1611_vm0, %v1609_v2  ;;  %1408 = vmatpush3.bf16.msra.mxu0 %v1560_v46  ;;  %v1581_v46 = vld [vmem:[%s2042_s3 + $0xa8] sm:$0xff]  }
  0x93   :  { %1409 = vmatprep.subr.bf16.mxu0 %v1609_v2 }
  0x96   :  { %1410 = vmatpush3.bf16.msra.mxu0 %v1561_v48 }
  0x97   :  { %1411 = vmatprep.subr.bf16.mxu0 %v1609_v2 }
  0x9a   :  { %1412 = vmatpush3.bf16.msra.mxu0 %v1562_v53  ;;  %v1588_v53 = vld [vmem:[%s2043_s5 + $0xa0] sm:$0xff]  }
  0x9b   :  { %1413 = vmatprep.subr.bf16.mxu0 %v1609_v2 }
  0x9e   :  { %1414 = vmatpush3.bf16.msra.mxu0 %v1563_v55  ;;  %v1185_v55 = vld [vmem:[%s2044_s1 + $0x4] sm:$0x3] }
  0x9f   :  { %1415 = vmatprep.subr.bf16.mxu0 %v1609_v2 }
  0xa2   :  { %1416 = vmatpush3.bf16.msra.mxu0 %v1564_v56  ;;  %v570_v56 = vrot.slane %v1185_v55, %v1727_v20 }
  0xa3   :  { %1417 = vmatprep.subr.bf16.mxu0 %v1609_v2 }
  0xa6   :  { %1418 = vmatpush3.bf16.msra.mxu0 %v1565_v59 }
  0xa7   :  { %1419 = vmatprep.subr.bf16.mxu0 %v1609_v2 }
  0xaa   :  { %1420 = vmatpush3.bf16.msra.mxu0 %v1566_v62 }
  0xab   :  { %1421 = vmatprep.subr.bf16.mxu0 %v1609_v2 }
  0xae   :  { %1422 = vmatpush3.bf16.msra.mxu0 %v1567_v63 }
  0xaf   :  { %1447 = vmatprep.subr.bf16.mxu0 %v1609_v2 }
 0x164   :  { %v164_v37 = vpop.f32.mrb[0].mxu0 }
 0x165   :  { %v165_v38 = vadd.f32 %v1112_v36, %v164_v37  ;;  %v1385_v39 = vpop.f32.mrb[1].mxu0 }
 0x166   :  { %v167_v40 = vpop.f32.mrb[2].mxu0  ;;  %v1576_v39 = vld [vmem:[%s2042_s3 + $0x80] sm:$0xff]  }
 0x167   :  { %v170_v41 = vmax.f32 %v165_v38, 0.0  ;;  %v1386_v42 = vpop.f32.mrb[3].mxu0  ;;  %v1577_v40 = vld [vmem:[%s2042_s3 + $0x88] sm:$0xff]  }
 0x168   :  { %v1579_v42 = vld [vmem:[%s2042_s3 + $0x98] sm:$0xff]  }
 0x169   :  { %v171_v43 = vpack.c.bf16 %v170_v41, %v170_v41  ;;  %v1578_v41 = vld [vmem:[%s2042_s3 + $0x90] sm:$0xff]  }
 0x16b   :  { %1404 = vmatmul.mubr.bf16.vlgmr.msra.gmra.mrb[0].mxu1 %v171_v43  ;;  %v1580_v43 = vld [vmem:[%s2042_s3 + $0xa0] sm:$0xff]  }
 0x16c   :  { %1443 = vmatprep.mubr.msk.bf16.mxu1 %vm1611_vm0, %v1609_v2 }
 0x23e   :  { %v277_v49 = vpop.f32.mrb[0].mxu1 }
 0x23f   :  { %v278_v50 = vadd.f32 %v1121_v47, %v277_v49  ;;  %v1405_v51 = vpop.f32.mrb[1].mxu1  ;;  %v1582_v49 = vld [vmem:[%s2042_s3 + $0xb0] sm:$0xff]  }
 0x240   :  { %v280_v52 = vpop.f32.mrb[2].mxu1  ;;  %v1585_v51 = vld [vmem:[%s2043_s5 + $0x88] sm:$0xff]  }
 0x241   :  { %284 = vrot.lane.b32.xlu1 %v278_v50, %s1614_s24  ;;  %v1406_v54 = vpop.f32.mrb[3].mxu1  ;;  %v1587_v52 = vld [vmem:[%s2043_s5 + $0x98] sm:$0xff]  }
 0x242   :  { %v1589_v54 = vld [vmem:[%s2043_s5 + $0xa8] sm:$0xff]  }
 0x245   :  { %288 = vrot.lane.b32.xlu1 %v278_v50, %s1615_s27  ;;  %v1583_v50 = vld [vmem:[%s2042_s3 + $0xb8] sm:$0xff]  }
 0x2b3   :  { %v285_v57 = vpop.permute.xlu1 %284 }
 0x2b4   :  { %v1782_v58 = vadd.f32 %v285_v57, %v1660_v1  ;;  %v580_v57 = vrot.slane %v1185_v55, %v1729_v21 }
 0x2b6   :  { %296 = vperm.xlu1 %1537, %v1782_v58  }
 0x2b7   :  { %v289_v60 = vpop.permute.xlu1 %288 }
 0x2b8   :  { %v1789_v61 = vadd.f32 %v289_v60, %v1660_v1 }
 0x2ba   :  { %306 = vperm.xlu0 %1538, %v1789_v61   ;;  %1539 = vset.pattern.permute.xlu1 %v1608_v0  ;;  %v1568_v0 = vld [vmem:[%s2043_s5 + $0x40] sm:$0xff]  }
 0x2bb   :  { %1428 = vmatpush3.bf16.msra.mxu1 %v1568_v0  ;;  %v1187_v0 = vld [vmem:[%s2045_s2 + $0x2] ss:$0 sm:$0xff] }
 0x2bc   :  { %1429 = vmatprep.subr.bf16.mxu1 %v1609_v2 }
 0x2be   :  { %1540 = vset.pattern.permute.xlu0 %v1610_v5  ;;  %v1571_v5 = vld [vmem:[%s2043_s5 + $0x58] sm:$0xff]  }
 0x2bf   :  { %1430 = vmatpush3.bf16.msra.mxu1 %v1569_v3 }
 0x2c0   :  { %1431 = vmatprep.subr.bf16.mxu1 %v1609_v2 }
 0x2c3   :  { %1432 = vmatpush3.bf16.msra.mxu1 %v1570_v4 }
 0x2c4   :  { %1433 = vmatprep.subr.bf16.mxu1 %v1609_v2 }
 0x2c7   :  { %1434 = vmatpush3.bf16.msra.mxu1 %v1571_v5 }
 0x2c8   :  { %1435 = vmatprep.subr.bf16.mxu1 %v1609_v2 }
 0x2cb   :  { %1436 = vmatpush3.bf16.msra.mxu1 %v1572_v6 }
 0x2cc   :  { %1437 = vmatprep.subr.bf16.mxu1 %v1609_v2 }
 0x2cf   :  { %1438 = vmatpush3.bf16.msra.mxu1 %v1573_v7  ;;  %v1590_v7 = vld [vmem:[%s2043_s5 + $0xb0] sm:$0xff]  }
 0x2d0   :  { %1439 = vmatprep.subr.bf16.mxu1 %v1609_v2 }
 0x2d3   :  { %1440 = vmatpush3.bf16.msra.mxu1 %v1574_v22 }
 0x2d4   :  { %1441 = vmatprep.subr.bf16.mxu1 %v1609_v2 }
 0x2d7   :  { %1442 = vmatpush3.bf16.msra.mxu1 %v1575_v23 }
 0x2d8   :  { %1467 = vmatprep.subr.bf16.mxu1 %v1609_v2 }
 0x335   :  { %v297_v11 = vpop.permute.xlu1 %296 }
 0x336   :  { %v303_v13 = vmul.f32 %v302_v9, %v297_v11  ;;  %v1205_v9 = vld [vmem:[%s2046_s4 + $0x2] ss:$0 sm:$0xff] }
 0x339   :  { %v307_v12 = vpop.permute.xlu0 %306 }
 0x33a   :  { %v313_v14 = vmul.f32 %v312_v10, %v307_v12 }
 0x33c   :  { %v314_v16 = vadd.f32 %v313_v14, %v303_v13 }
 0x33e   :  { %v323_v17 = vadd.f32 %v1132_v15, %v314_v16 }
 0x340   :  { %v324_v18 = vmax.f32 %v323_v17, 0.0  ;;  %v1592_v17 = vld [vmem:[%s2042_s3 + $0xc0] sm:$0xff]  }
 0x342   :  { %v325_v19 = vpack.c.bf16 %v324_v18, %v324_v18  ;;  %v1231_v18 = vld [vmem:[%s2047_s6 + $0x2] ss:$0 sm:$0xff] }
 0x344   :  { %1424 = vmatmul.mubr.bf16.vlgmr.msra.gmra.mrb[4].mxu0 %v325_v19  ;;  %v1593_v19 = vld [vmem:[%s2042_s3 + $0xc8] sm:$0xff]  }
 0x345   :  { %1463 = vmatprep.mubr.msk.bf16.mxu0 %vm1611_vm0, %v1609_v2  ;;  %1448 = vmatpush3.bf16.msra.mxu0 %v1576_v39  ;;  %v1604_v39 = vld [vmem:[%s2043_s5 + $0xe0] sm:$0xff]  }
 0x346   :  { %1449 = vmatprep.subr.bf16.mxu0 %v1609_v2 }
 0x349   :  { %1450 = vmatpush3.bf16.msra.mxu0 %v1577_v40  ;;  %v1605_v40 = vld [vmem:[%s2043_s5 + $0xe8] sm:$0xff]  }
 0x34a   :  { %1451 = vmatprep.subr.bf16.mxu0 %v1609_v2 }
 0x34d   :  { %1452 = vmatpush3.bf16.msra.mxu0 %v1578_v41  ;;  %v1240_v41 = vld [vmem:[%s2044_s1 + $0x6] sm:$0x3] }
 0x34e   :  { %1453 = vmatprep.subr.bf16.mxu0 %v1609_v2 }
 0x351   :  { %1454 = vmatpush3.bf16.msra.mxu0 %v1579_v42  ;;  %v841_v42 = vrot.slane %v1240_v41, %v1727_v20  ;;  %v1607_v20 = vld [vmem:[%s2043_s5 + $0xf8] sm:$0xff]  }
 0x352   :  { %1455 = vmatprep.subr.bf16.mxu0 %v1609_v2 }
 0x355   :  { %1456 = vmatpush3.bf16.msra.mxu0 %v1580_v43  ;;  %v851_v43 = vrot.slane %v1240_v41, %v1729_v21  ;;  %v1260_v21 = vld [vmem:[%s2046_s4 + $0x3] ss:$0 sm:$0xff] }
 0x356   :  { %1457 = vmatprep.subr.bf16.mxu0 %v1609_v2 }
 0x359   :  { %1458 = vmatpush3.bf16.msra.mxu0 %v1581_v46 }
 0x35a   :  { %1459 = vmatprep.subr.bf16.mxu0 %v1609_v2 }
 0x35d   :  { %1460 = vmatpush3.bf16.msra.mxu0 %v1582_v49 }
 0x35e   :  { %1461 = vmatprep.subr.bf16.mxu0 %v1609_v2 }
 0x361   :  { %1462 = vmatpush3.bf16.msra.mxu0 %v1583_v50 }
 0x362   :  { %1487 = vmatprep.subr.bf16.mxu0 %v1609_v2 }
 0x417   :  { %v433_v25 = vpop.f32.mrb[4].mxu0 }
 0x418   :  { %v434_v26 = vadd.f32 %v1150_v24, %v433_v25  ;;  %v1425_v27 = vpop.f32.mrb[5].mxu0 }
 0x419   :  { %v436_v28 = vpop.f32.mrb[6].mxu0 }
 0x41a   :  { %v439_v29 = vmax.f32 %v434_v26, 0.0  ;;  %v1426_v30 = vpop.f32.mrb[7].mxu0  ;;  %v1594_v26 = vld [vmem:[%s2042_s3 + $0xd0] sm:$0xff]   ;;  %v1595_v28 = vld [vmem:[%s2042_s3 + $0xd8] sm:$0xff]  }
 0x41c   :  { %v440_v31 = vpack.c.bf16 %v439_v29, %v439_v29  ;;  %v1596_v29 = vld [vmem:[%s2042_s3 + $0xe0] sm:$0xff]  }
 0x41e   :  { %1444 = vmatmul.mubr.bf16.vlgmr.msra.gmra.mrb[4].mxu1 %v440_v31 }
 0x41f   :  { %1483 = vmatprep.mubr.msk.bf16.mxu1 %vm1611_vm0, %v1609_v2 }
 0x4f1   :  { %v548_v33 = vpop.f32.mrb[4].mxu1 }
 0x4f2   :  { %v549_v34 = vadd.f32 %v1176_v32, %v548_v33  ;;  %v1445_v35 = vpop.f32.mrb[5].mxu1  ;;  %v1597_v32 = vld [vmem:[%s2042_s3 + $0xe8] sm:$0xff]  }
 0x4f3   :  { %v551_v36 = vpop.f32.mrb[6].mxu1  ;;  %v1599_v35 = vld [vmem:[%s2042_s3 + $0xf8] sm:$0xff]  }
 0x4f4   :  { %556 = vrot.lane.b32.xlu1 %v549_v34, %s1614_s24  ;;  %v1446_v37 = vpop.f32.mrb[7].mxu1  ;;  %v1855_v38 = vadd.f32 %v549_v34, %v1660_v1  ;;  %v1602_v36 = vld [vmem:[%s2043_s5 + $0xd0] sm:$0xff]  }
 0x4f5   :  { %v1603_v37 = vld [vmem:[%s2043_s5 + $0xd8] sm:$0xff]  }
 0x4f8   :  { %564 = vperm.xlu1 %1539, %v1855_v38  }
 0x4fc   :  { %1542 = vset.pattern.permute.xlu1 %v1613_v45 }
 0x566   :  { %v557_v47 = vpop.permute.xlu1 %556 }
 0x567   :  { %v1884_v48 = vadd.f32 %v557_v47, %v1660_v1  ;;  %v1584_v1 = vld [vmem:[%s2043_s5 + $0x80] sm:$0xff]  }
 0x568   :  { %1468 = vmatpush3.bf16.msra.mxu1 %v1584_v1  ;;  %v1242_v1 = vld [vmem:[%s2045_s2 + $0x3] ss:$0 sm:$0xff] }
 0x569   :  { %574 = vperm.xlu0 %1540, %v1884_v48   ;;  %1469 = vmatprep.subr.bf16.mxu1 %v1609_v2 }
 0x56c   :  { %1470 = vmatpush3.bf16.msra.mxu1 %v1585_v51 }
 0x56d   :  { %1541 = vset.pattern.permute.xlu0 %v1612_v44  ;;  %v1586_v44 = vld [vmem:[%s2043_s5 + $0x90] sm:$0xff]   ;;  %1471 = vmatprep.subr.bf16.mxu1 %v1609_v2 }
 0x570   :  { %1472 = vmatpush3.bf16.msra.mxu1 %v1586_v44 }
 0x571   :  { %1473 = vmatprep.subr.bf16.mxu1 %v1609_v2 }
 0x574   :  { %1474 = vmatpush3.bf16.msra.mxu1 %v1587_v52 }
 0x575   :  { %1475 = vmatprep.subr.bf16.mxu1 %v1609_v2 }
 0x577   :  { %v565_v59 = vpop.permute.xlu1 %564 }
 0x578   :  { %1476 = vmatpush3.bf16.msra.mxu1 %v1588_v53  ;;  %v571_v62 = vmul.f32 %v570_v56, %v565_v59 }
 0x579   :  { %1477 = vmatprep.subr.bf16.mxu1 %v1609_v2 }
 0x57c   :  { %1478 = vmatpush3.bf16.msra.mxu1 %v1589_v54  ;;  %v1606_v54 = vld [vmem:[%s2043_s5 + $0xf0] sm:$0xff]  }
 0x57d   :  { %1479 = vmatprep.subr.bf16.mxu1 %v1609_v2 }
 0x580   :  { %1480 = vmatpush3.bf16.msra.mxu1 %v1590_v7 }
 0x581   :  { %1481 = vmatprep.subr.bf16.mxu1 %v1609_v2 }
 0x584   :  { %1482 = vmatpush3.bf16.msra.mxu1 %v1591_v8 }
 0x585   :  { %1507 = vmatprep.subr.bf16.mxu1 %v1609_v2 }
 0x5e8   :  { %v575_v60 = vpop.permute.xlu0 %574 }
 0x5e9   :  { %v581_v63 = vmul.f32 %v580_v57, %v575_v60 }
 0x5eb   :  { %v582_v3 = vadd.f32 %v581_v63, %v571_v62 }
 0x5ed   :  { %v591_v4 = vadd.f32 %v1187_v0, %v582_v3 }
 0x5ef   :  { %v592_v5 = vmax.f32 %v591_v4, 0.0 }
 0x5f1   :  { %v593_v6 = vpack.c.bf16 %v592_v5, %v592_v5 }
 0x5f3   :  { %1464 = vmatmul.mubr.bf16.vlgmr.msra.gmra.mrb[8].mxu0 %v593_v6 }
 0x5f4   :  { %1503 = vmatprep.mubr.msk.bf16.mxu0 %vm1611_vm0, %v1609_v2  ;;  %1488 = vmatpush3.bf16.msra.mxu0 %v1592_v17 }
 0x5f5   :  { %1489 = vmatprep.subr.bf16.mxu0 %v1609_v2 }
 0x5f8   :  { %1490 = vmatpush3.bf16.msra.mxu0 %v1593_v19 }
 0x5f9   :  { %1491 = vmatprep.subr.bf16.mxu0 %v1609_v2 }
 0x5fc   :  { %1492 = vmatpush3.bf16.msra.mxu0 %v1594_v26 }
 0x5fd   :  { %1493 = vmatprep.subr.bf16.mxu0 %v1609_v2 }
 0x600   :  { %1494 = vmatpush3.bf16.msra.mxu0 %v1595_v28 }
 0x601   :  { %1495 = vmatprep.subr.bf16.mxu0 %v1609_v2 }
 0x604   :  { %1496 = vmatpush3.bf16.msra.mxu0 %v1596_v29 }
 0x605   :  { %1497 = vmatprep.subr.bf16.mxu0 %v1609_v2 }
 0x608   :  { %1498 = vmatpush3.bf16.msra.mxu0 %v1597_v32 }
 0x609   :  { %1499 = vmatprep.subr.bf16.mxu0 %v1609_v2 }
 0x6c6   :  { %v701_v10 = vpop.f32.mrb[8].mxu0 }
 0x6c7   :  { %v702_v11 = vadd.f32 %v1205_v9, %v701_v10  ;;  %v1465_v12 = vpop.f32.mrb[9].mxu0 }
 0x6c8   :  { %v704_v13 = vpop.f32.mrb[10].mxu0 }
 0x6c9   :  { %v707_v14 = vmax.f32 %v702_v11, 0.0  ;;  %v1466_v15 = vpop.f32.mrb[11].mxu0 }
 0x6cb   :  { %v708_v16 = vpack.c.bf16 %v707_v14, %v707_v14 }
 0x6cd   :  { %1484 = vmatmul.mubr.bf16.vlgmr.msra.gmra.mrb[8].mxu1 %v708_v16 }
 0x6ce   :  { %1523 = vmatprep.mubr.msk.bf16.mxu1 %vm1611_vm0, %v1609_v2 }
 0x7a0   :  { %v816_v22 = vpop.f32.mrb[8].mxu1 }
 0x7a1   :  { %v817_v23 = vadd.f32 %v1231_v18, %v816_v22  ;;  %v1485_v24 = vpop.f32.mrb[9].mxu1 }
 0x7a2   :  { %v819_v25 = vpop.f32.mrb[10].mxu1 }
 0x7a3   :  { %823 = vrot.lane.b32.xlu1 %v817_v23, %s1614_s24  ;;  %v1486_v27 = vpop.f32.mrb[11].mxu1 }
 0x7a7   :  { %827 = vrot.lane.b32.xlu1 %v817_v23, %s1615_s27 }
 0x815   :  { %v824_v30 = vpop.permute.xlu1 %823 }
 0x816   :  { %v1969_v31 = vadd.f32 %v824_v30, %v1782_v58  ;;  %v1598_v58 = vld [vmem:[%s2042_s3 + $0xf0] sm:$0xff]  }
 0x817   :  { %1500 = vmatpush3.bf16.msra.mxu0 %v1598_v58 }
 0x818   :  { %835 = vperm.xlu0 %1541, %v1969_v31   ;;  %1501 = vmatprep.subr.bf16.mxu0 %v1609_v2 }
 0x819   :  { %v828_v33 = vpop.permute.xlu1 %827 }
 0x81a   :  { %v1976_v34 = vadd.f32 %v828_v33, %v1789_v61  ;;  %v1600_v61 = vld [vmem:[%s2043_s5 + $0xc0] sm:$0xff]  }
 0x81b   :  { %1502 = vmatpush3.bf16.msra.mxu0 %v1599_v35  ;;  %1508 = vmatpush3.bf16.msra.mxu1 %v1600_v61 }
 0x81c   :  { %845 = vperm.xlu1 %1542, %v1976_v34   ;;  %1543 = vset.pattern.permute.xlu0 %v1613_v45  ;;  %v1601_v45 = vld [vmem:[%s2043_s5 + $0xc8] sm:$0xff]  }
 0x81d   :  { %1509 = vmatprep.subr.bf16.mxu1 %v1609_v2 }
 0x81f   :  { %1510 = vmatpush3.bf16.msra.mxu1 %v1601_v45 }
 0x820   :  { %1511 = vmatprep.subr.bf16.mxu1 %v1609_v2 }
 0x823   :  { %1512 = vmatpush3.bf16.msra.mxu1 %v1602_v36 }
 0x824   :  { %1513 = vmatprep.subr.bf16.mxu1 %v1609_v2 }
 0x827   :  { %1514 = vmatpush3.bf16.msra.mxu1 %v1603_v37 }
 0x828   :  { %1515 = vmatprep.subr.bf16.mxu1 %v1609_v2 }
 0x82b   :  { %1516 = vmatpush3.bf16.msra.mxu1 %v1604_v39 }
 0x82c   :  { %1517 = vmatprep.subr.bf16.mxu1 %v1609_v2 }
 0x82f   :  { %1518 = vmatpush3.bf16.msra.mxu1 %v1605_v40 }
 0x830   :  { %1519 = vmatprep.subr.bf16.mxu1 %v1609_v2 }
 0x833   :  { %1520 = vmatpush3.bf16.msra.mxu1 %v1606_v54 }
 0x834   :  { %1521 = vmatprep.subr.bf16.mxu1 %v1609_v2  ;;  %v1286_v2 = vld [vmem:[%s2047_s6 + $0x3] ss:$0 sm:$0xff] }
 0x837   :  { %1522 = vmatpush3.bf16.msra.mxu1 %v1607_v20 }
 0x897   :  { %v836_v46 = vpop.permute.xlu0 %835 }
 0x898   :  { %v842_v49 = vmul.f32 %v841_v42, %v836_v46 }
 0x89b   :  { %v846_v47 = vpop.permute.xlu1 %845 }
 0x89c   :  { %v852_v50 = vmul.f32 %v851_v43, %v846_v47 }
 0x89e   :  { %v853_v51 = vadd.f32 %v852_v50, %v842_v49 }
 0x8a0   :  { %v862_v44 = vadd.f32 %v1242_v1, %v853_v51 }
 0x8a2   :  { %v863_v52 = vmax.f32 %v862_v44, 0.0 }
 0x8a4   :  { %v864_v53 = vpack.c.bf16 %v863_v52, %v863_v52 }
 0x8a6   :  { %1504 = vmatmul.mubr.bf16.vlgmr.msra.gmra.mrb[12].mxu0 %v864_v53 }
 0x979   :  { %v972_v55 = vpop.f32.mrb[12].mxu0 }
 0x97a   :  { %v973_v56 = vadd.f32 %v1260_v21, %v972_v55  ;;  %v1505_v57 = vpop.f32.mrb[13].mxu0 }
 0x97b   :  { %v975_v59 = vpop.f32.mrb[14].mxu0 }
 0x97c   :  { %v978_v60 = vmax.f32 %v973_v56, 0.0  ;;  %v1506_v62 = vpop.f32.mrb[15].mxu0 }
 0x97e   :  { %v979_v63 = vpack.c.bf16 %v978_v60, %v978_v60 }
 0x980   :  { %1524 = vmatmul.mubr.bf16.vlgmr.msra.gmra.mrb[12].mxu1 %v979_v63 }
 0xa53   :  { %v1087_v0 = vpop.f32.mrb[12].mxu1 }
 0xa54   :  { %v1088_v3 = vadd.f32 %v1286_v2, %v1087_v0  ;;  %v1525_v4 = vpop.f32.mrb[13].mxu1 }
 0xa55   :  { %v1090_v5 = vpop.f32.mrb[14].mxu1 }
 0xa56   :  { %1095 = vrot.lane.b32.xlu1 %v1088_v3, %s1614_s24  ;;  %v1526_v6 = vpop.f32.mrb[15].mxu1  ;;  %v1093_v7 = vadd.f32 %v1088_v3, %v1855_v38 }
 0xa58   :  { %v1100_v10 = vsel %vm1099_vm1, %v1093_v7, %v1969_v31 }
 0xac8   :  { %v1096_v8 = vpop.permute.xlu1 %1095 }
 0xac9   :  { %v1098_v9 = vadd.f32 %v1096_v8, %v1884_v48 }
 0xacb   :  { %v1102_v11 = vsel %vm1101_vm2, %v1100_v10, %v1098_v9 }
 0xacc   :  { %v1104_v12 = vsel %vm1103_vm3, %v1102_v11, %v1976_v34 }
 0xacd   :  { %1106 = vst.msk [vmem:[%s2048_s7] sm:$0xff] %vm1105_vm4, %v1104_v12 }

</bundles_post_ra>
